<compile_context>
chip_gen: v7x
topology: tpu7x:2x2x1
jax: 0.10.0
libtpu: 0.0.40
codegen_flags: <defaults>
</compile_context>

<pallas_src>
import math
from functools import partial

import numpy as np
import jax
import jax.numpy as jnp
from jax import lax
from jax.experimental import pallas as pl
from jax.experimental.pallas import tpu as pltpu

_VMEM_LIMIT = 48 * 1024 * 1024  # <= 48 MiB so tiles + double buffering fit v7x's 64 MiB


def _cparams(*sem):
    return pltpu.CompilerParams(dimension_semantics=sem,
                                vmem_limit_bytes=_VMEM_LIMIT)


def _round_up(x, m):
    return ((x + m - 1) // m) * m


# ------------------------- tiled matmul + bias kernel -------------------------

def _matmul_bias_kernel(a_ref, w_ref, b_ref, o_ref, acc_ref):
    @pl.when(pl.program_id(2) == 0)
    def _():
        acc_ref[...] = jnp.zeros_like(acc_ref)

    acc_ref[...] += jnp.dot(a_ref[...], w_ref[...],
                            preferred_element_type=jnp.float32)

    @pl.when(pl.program_id(2) == pl.num_programs(2) - 1)
    def _():
        o_ref[...] = acc_ref[...] + b_ref[...]


def matmul_bias(a, w, bias=None):
    """a: (M, K), w: (K, N), bias: (N,) -> (M, N) float32.

    Tiled bf16 MXU matmul with f32 accumulation; M/N/K padded to tile
    multiples (N, K padded to 128 lanes for unmasked stores / aligned loads).
    """
    M, K = a.shape
    N = w.shape[1]
    if bias is None:
        bias = jnp.zeros((N,), jnp.float32)

    # --- tile selection (keep padded extents divisible by the tiles) ---
    Mp = _round_up(M, 8)
    if Mp <= 256:
        tm = Mp
    else:
        tm = 8
        for t in (256, 128, 64, 32, 16):
            if Mp % t == 0:
                tm = t
                break

    Np = _round_up(N, 128)
    tn = Np if Np <= 256 else (256 if Np % 256 == 0 else 128)

    Kp = _round_up(K, 128)
    if Kp <= 512:
        tk = Kp
    else:
        tk = 128
        for t in (512, 384, 256):
            if Kp % t == 0:
                tk = t
                break

    a_p = jnp.pad(a.astype(jnp.bfloat16), ((0, Mp - M), (0, Kp - K)))
    w_p = jnp.pad(w.astype(jnp.bfloat16), ((0, Kp - K), (0, Np - N)))
    b_p = jnp.pad(bias.astype(jnp.float32).reshape(1, N), ((0, 0), (0, Np - N)))

    grid = (Mp // tm, Np // tn, Kp // tk)
    out = pl.pallas_call(
        _matmul_bias_kernel,
        out_shape=jax.ShapeDtypeStruct((Mp, Np), jnp.float32),
        grid=grid,
        in_specs=[pl.BlockSpec((tm, tk), lambda i, j, k: (i, k)),
                  pl.BlockSpec((tk, tn), lambda i, j, k: (k, j)),
                  pl.BlockSpec((1, tn), lambda i, j, k: (0, j))],
        out_specs=pl.BlockSpec((tm, tn), lambda i, j, k: (i, j)),
        scratch_shapes=[pltpu.VMEM((tm, tn), jnp.float32)],
        compiler_params=_cparams("parallel", "parallel", "arbitrary"),
        cost_estimate=pl.CostEstimate(
            flops=2 * Mp * Np * Kp,
            transcendentals=0,
            bytes_accessed=Mp * Kp * 2 + Kp * Np * 2 + Mp * Np * 4),
    )(a_p, w_p, b_p)
    return out[:M, :N]


# ------------------------- GroupNorm (+Swish) kernel -------------------------

def _gn_kernel(x_ref, g_ref, b_ref, o_ref, *, swish, eps):
    x = x_ref[...]                                  # (tr, Cg, HW)
    denom = x.shape[1] * x.shape[2]
    s1 = jnp.sum(x, axis=2, keepdims=True)          # lane reduce
    mean = jnp.sum(s1, axis=1, keepdims=True) / denom
    d = x - mean
    v1 = jnp.sum(d * d, axis=2, keepdims=True)
    var = jnp.sum(v1, axis=1, keepdims=True) / denom
    y = d * lax.rsqrt(var + eps)
    y = y * g_ref[...] + b_ref[...]                 # (tr, Cg, 1) lane-broadcast
    if swish:
        y = y * jax.nn.sigmoid(y)
    o_ref[...] = y


def group_norm(x, gamma, beta, groups, swish):
    """GroupNorm (optionally fused with Swish) on NCHW input, tiled over B*groups."""
    B, C, H, W = x.shape
    Cg = C // groups
    HW = H * W
    R = B * groups
    xr = x.reshape(R, Cg, HW).astype(jnp.float32)
    gmap = jnp.broadcast_to(gamma.reshape(1, groups, Cg),
                            (B, groups, Cg)).reshape(R, Cg, 1).astype(jnp.float32)
    bmap = jnp.broadcast_to(beta.reshape(1, groups, Cg),
                            (B, groups, Cg)).reshape(R, Cg, 1).astype(jnp.float32)

    if R % 32 == 0:
        tr = 32
    elif R % 8 == 0:
        tr = 8
    else:
        tr = R

    out = pl.pallas_call(
        partial(_gn_kernel, swish=swish, eps=1e-5),
        out_shape=jax.ShapeDtypeStruct((R, Cg, HW), jnp.float32),
        grid=(R // tr,),
        in_specs=[pl.BlockSpec((tr, Cg, HW), lambda i: (i, 0, 0)),
                  pl.BlockSpec((tr, Cg, 1), lambda i: (i, 0, 0)),
                  pl.BlockSpec((tr, Cg, 1), lambda i: (i, 0, 0))],
        out_specs=pl.BlockSpec((tr, Cg, HW), lambda i: (i, 0, 0)),
        compiler_params=_cparams("parallel"),
    )(xr, gmap, bmap)
    return out.reshape(B, C, H, W)


# ------------------------- self-attention kernel -------------------------

def _attn_kernel(q_ref, k_ref, v_ref, o_ref, *, scale):
    q = q_ref[0]          # (S, D)
    k = k_ref[0]
    v = v_ref[0]
    # scores[s, y] = sum_d q[s, d] * k[y, d]  (trailing-dim contraction)
    s = lax.dot_general(q, k, (((1,), (1,)), ((), ())),
                        preferred_element_type=jnp.float32) * scale
    s = s - jnp.max(s, axis=-1, keepdims=True)
    p = jnp.exp(s)
    p = p * pl.reciprocal(jnp.sum(p, axis=-1, keepdims=True), approx=True)
    # out[s, d] = sum_y p[s, y] * v[y, d]
    o_ref[0] = jnp.dot(p, v, preferred_element_type=jnp.float32)


def attention(q, k, v, scale):
    """q, k, v: (B*n_head, S, head_dim) -> (B*n_head, S, head_dim)."""
    BN, S, D = q.shape
    return pl.pallas_call(
        partial(_attn_kernel, scale=scale),
        out_shape=jax.ShapeDtypeStruct((BN, S, D), jnp.float32),
        grid=(BN,),
        in_specs=[pl.BlockSpec((1, S, D), lambda i: (i, 0, 0))] * 3,
        out_specs=pl.BlockSpec((1, S, D), lambda i: (i, 0, 0)),
        compiler_params=_cparams("parallel"),
    )(q, k, v)


# ------------------------- diffusion q_sample kernel -------------------------

def _qsample_kernel(y0_ref, n_ref, g_ref, o_ref):
    g = g_ref[...]                      # (B, 1)
    o_ref[...] = jnp.sqrt(g) * y0_ref[...] + jnp.sqrt(1.0 - g) * n_ref[...]


def q_sample(y0, sample_gammas, noise):
    B = y0.shape[0]
    flat = y0.reshape(B, -1)
    nflat = noise.reshape(B, -1)
    out = pl.pallas_call(
        _qsample_kernel,
        out_shape=jax.ShapeDtypeStruct(flat.shape, jnp.float32),
        grid=(1,),
        in_specs=[pl.BlockSpec(flat.shape, lambda i: (0, 0)),
                  pl.BlockSpec(flat.shape, lambda i: (0, 0)),
                  pl.BlockSpec((B, 1), lambda i: (0, 0))],
        out_specs=pl.BlockSpec(flat.shape, lambda i: (0, 0)),
        compiler_params=_cparams("arbitrary"),
    )(flat, nflat, sample_gammas)
    return out.reshape(y0.shape)


# ------------------------- conv / linear glue -------------------------

def conv2d(x, w, b, stride=1, pad=1):
    """NCHW conv via im2col + tiled Pallas matmul (matches torch.nn.Conv2d)."""
    B, C, H, W = x.shape
    Cout, Cin, kh, kw = w.shape
    if kh == 1 and kw == 1 and stride == 1 and pad == 0:
        a = x.transpose(0, 2, 3, 1).reshape(B * H * W, C)
        out = matmul_bias(a, w.reshape(Cout, Cin).T, b)
        return out.reshape(B, H, W, Cout).transpose(0, 3, 1, 2)
    Ho = (H + 2 * pad - kh) // stride + 1
    Wo = (W + 2 * pad - kw) // stride + 1
    xp = jnp.pad(x, ((0, 0), (0, 0), (pad, pad), (pad, pad)))
    cols = []
    for i in range(kh):
        for j in range(kw):
            cols.append(lax.slice(
                xp, (0, 0, i, j),
                (B, C, i + (Ho - 1) * stride + 1, j + (Wo - 1) * stride + 1),
                (1, 1, stride, stride)))
    patches = jnp.stack(cols, axis=2)             # (B, C, kh*kw, Ho, Wo)
    a = patches.transpose(0, 3, 4, 1, 2).reshape(B * Ho * Wo, C * kh * kw)
    out = matmul_bias(a, w.reshape(Cout, Cin * kh * kw).T, b)
    return out.reshape(B, Ho, Wo, Cout).transpose(0, 3, 1, 2)


def linear(x, w, b):
    """x: (M, in), w: (out, in) torch convention."""
    return matmul_bias(x, w.T, b)


# ------------------------- deterministic parameter init -------------------------

class Init:
    def __init__(self, seed=0):
        self.key = jax.random.PRNGKey(seed)

    def _take(self):
        self.key, sub = jax.random.split(self.key)
        return sub

    def conv(self, cout, cin, k, bias=True):
        fan_in = cin * k * k
        w = jax.random.normal(self._take(), (cout, cin, k, k), jnp.float32) / np.sqrt(fan_in)
        return {'w': w,
                'b': jnp.zeros((cout,), jnp.float32) if bias else None}

    def linear(self, cout, cin):
        w = jax.random.normal(self._take(), (cout, cin), jnp.float32) / np.sqrt(cin)
        return {'w': w, 'b': jnp.zeros((cout,), jnp.float32)}

    def gn(self, c):
        return {'g': jnp.ones((c,), jnp.float32), 'b': jnp.zeros((c,), jnp.float32)}


def make_rb(init, dim, dim_out, emb_dim, with_attn):
    p = {
        'noise_lin': init.linear(dim_out, emb_dim),
        'b1_gn': init.gn(dim),
        'b1_conv': init.conv(dim_out, dim, 3),
        'b2_gn': init.gn(dim_out),
        'b2_conv': init.conv(dim_out, dim_out, 3),
        'res_conv': init.conv(dim_out, dim, 1) if dim != dim_out else None,
        'attn': None,
    }
    if with_attn:
        p['attn'] = {'norm': init.gn(dim_out),
                     'qkv': init.conv(dim_out * 3, dim_out, 1, bias=False),
                     'out': init.conv(dim_out, dim_out, 1)}
    return p


def build_unet_params(init, in_channel=28, out_channel=13, inner_channel=32,
                      norm_groups=32, channel_mults=(1, 2, 4, 8, 8),
                      attn_res=(8,), res_blocks=3, image_size=128):
    p = {'inner_channel': inner_channel, 'norm_groups': norm_groups}
    p['mlp_lin1'] = init.linear(inner_channel * 4, inner_channel)
    p['mlp_lin2'] = init.linear(inner_channel, inner_channel * 4)

    num_mults = len(channel_mults)
    pre = inner_channel
    feat = [pre]
    now_res = image_size

    downs = [{'type': 'conv', 'stride': 1, **init.conv(inner_channel, in_channel, 3)}]
    for ind in range(num_mults):
        is_last = ind == num_mults - 1
        use_attn = now_res in attn_res
        cm = inner_channel * channel_mults[ind]
        for _ in range(res_blocks):
            downs.append({'type': 'rb', 'p': make_rb(init, pre, cm, inner_channel, use_attn)})
            feat.append(cm)
            pre = cm
        if not is_last:
            downs.append({'type': 'conv', 'stride': 2, **init.conv(pre, pre, 3)})
            feat.append(pre)
            now_res //= 2
    p['downs'] = downs

    p['mid'] = [{'type': 'rb', 'p': make_rb(init, pre, pre, inner_channel, True)},
                {'type': 'rb', 'p': make_rb(init, pre, pre, inner_channel, False)}]

    ups = []
    for ind in reversed(range(num_mults)):
        is_last = ind < 1
        use_attn = now_res in attn_res
        cm = inner_channel * channel_mults[ind]
        for _ in range(res_blocks + 1):
            ups.append({'type': 'rb',
                        'p': make_rb(init, pre + feat.pop(), cm, inner_channel, use_attn)})
            pre = cm
        if not is_last:
            ups.append({'type': 'up', **init.conv(pre, pre, 3)})
            now_res *= 2
    p['ups'] = ups

    p['final_gn'] = init.gn(pre)
    p['final_conv'] = init.conv(out_channel, pre, 3)
    return p


# ------------------------- UNet forward -------------------------

def block_forward(x, gn_p, conv_p, groups):
    h = group_norm(x, gn_p['g'], gn_p['b'], groups, swish=True)
    return conv2d(h, conv_p['w'], conv_p['b'], stride=1, pad=1)


def resnet_block_forward(x, t_emb, p, groups):
    B = x.shape[0]
    h = block_forward(x, p['b1_gn'], p['b1_conv'], groups)
    add = linear(t_emb, p['noise_lin']['w'], p['noise_lin']['b'])   # FeatureWiseAffine
    h = h + add.reshape(B, -1, 1, 1)
    h = block_forward(h, p['b2_gn'], p['b2_conv'], groups)
    if p['res_conv'] is not None:
        res = conv2d(x, p['res_conv']['w'], p['res_conv']['b'], stride=1, pad=0)
    else:
        res = x
    return h + res


def self_attention_forward(x, p, groups):
    B, C, H, W = x.shape
    n_head = 1
    head_dim = C // n_head
    S = H * W
    norm = group_norm(x, p['norm']['g'], p['norm']['b'], groups, swish=False)
    qkv = conv2d(norm, p['qkv']['w'], p['qkv']['b'], stride=1, pad=0)   # (B, 3C, H, W)
    qkv = qkv.reshape(B, n_head, head_dim * 3, S)
    q, k, v = jnp.split(qkv, 3, axis=2)                                 # (B, n, D, S) each
    q = q.reshape(B * n_head, head_dim, S).transpose(0, 2, 1)           # (BN, S, D)
    k = k.reshape(B * n_head, head_dim, S).transpose(0, 2, 1)
    v = v.reshape(B * n_head, head_dim, S).transpose(0, 2, 1)
    out = attention(q, k, v, scale=1.0 / math.sqrt(C))                  # (BN, S, D)
    out = out.transpose(0, 2, 1).reshape(B, C, H, W)
    out = conv2d(out, p['out']['w'], p['out']['b'], stride=1, pad=0)
    return out + x


def rb_with_attn_forward(x, t_emb, layer, groups):
    p = layer['p']
    x = resnet_block_forward(x, t_emb, p, groups)
    if p['attn'] is not None:
        x = self_attention_forward(x, p['attn'], groups)
    return x


def noise_level_mlp(noise_level, p, dim):
    # noise_level: (B, 1) -> (B, dim)
    B = noise_level.shape[0]
    count = dim // 2
    step = jnp.arange(count, dtype=noise_level.dtype) / count
    enc = noise_level[:, :, None] * jnp.exp(-math.log(1e4) * step)[None, None, :]
    enc = jnp.concatenate([jnp.sin(enc), jnp.cos(enc)], axis=-1)        # (B, 1, dim)
    h = linear(enc.reshape(B, dim), p['mlp_lin1']['w'], p['mlp_lin1']['b'])
    h = h * jax.nn.sigmoid(h)                                           # Swish
    h = linear(h, p['mlp_lin2']['w'], p['mlp_lin2']['b'])
    return h


def unet_forward(p, x, noise_level):
    groups = p['norm_groups']
    t_emb = noise_level_mlp(noise_level, p, p['inner_channel'])
    feats = []
    for layer in p['downs']:
        if layer['type'] == 'rb':
            x = rb_with_attn_forward(x, t_emb, layer, groups)
        else:
            x = conv2d(x, layer['w'], layer['b'], stride=layer['stride'], pad=1)
        feats.append(x)
    for layer in p['mid']:
        x = rb_with_attn_forward(x, t_emb, layer, groups)
    for layer in p['ups']:
        if layer['type'] == 'rb':
            x = rb_with_attn_forward(jnp.concatenate([x, feats.pop()], axis=1),
                                     t_emb, layer, groups)
        else:  # Upsample: nearest x2 then 3x3 conv
            x = jnp.repeat(jnp.repeat(x, 2, axis=2), 2, axis=3)
            x = conv2d(x, layer['w'], layer['b'], stride=1, pad=1)
    x = group_norm(x, p['final_gn']['g'], p['final_gn']['b'], groups, swish=True)
    x = conv2d(x, p['final_conv']['w'], p['final_conv']['b'], stride=1, pad=1)
    return x


# ------------------------- Diffusion_CR forward -------------------------

def make_gammas(n_timestep=8, linear_start=1e-6, linear_end=0.01):
    betas = np.linspace(linear_start, linear_end, n_timestep, dtype=np.float64)
    alphas = 1.0 - betas
    gammas = np.cumprod(alphas, axis=0)
    return jnp.asarray(gammas, dtype=jnp.float32), int(n_timestep)


def diffusion_cr_forward(params, gammas, num_timesteps, y_0, y_ms, y_sar, key):
    b = y_0.shape[0]
    # original_to_input: [0, 1] -> [-1, 1]
    y_0 = y_0 * 2.0 - 1.0
    y_ms = y_ms * 2.0 - 1.0
    y_sar = y_sar * 2.0 - 1.0

    k_t, k_u, k_n = jax.random.split(key, 3)
    # TODO(synk): torch RNG (randint / rand / randn) replaced by jax.random; not bit-identical.
    t = jax.random.randint(k_t, (b,), 1, num_timesteps)
    gamma_t1 = gammas[t - 1].reshape(b, 1)
    sqrt_gamma_t2 = gammas[t].reshape(b, 1)
    sample_gammas = (sqrt_gamma_t2 - gamma_t1) * jax.random.uniform(k_u, (b, 1)) + gamma_t1

    noise = jax.random.normal(k_n, y_0.shape, jnp.float32)
    y_noisy = q_sample(y_0, sample_gammas, noise)
    x = jnp.concatenate([y_noisy, y_ms, y_sar], axis=1)   # (b, 28, H, W)
    noise_hat = unet_forward(params, x, sample_gammas)
    return noise_hat, noise


if __name__ == "__main__":
    B, H, W = 2, 16, 16
    key = jax.random.PRNGKey(0)
    k0, k1, k2, k3 = jax.random.split(key, 4)
    y_0 = jax.random.uniform(k0, (B, 13, H, W), jnp.float32)    # clean Sentinel-2
    y_ms = jax.random.uniform(k1, (B, 13, H, W), jnp.float32)   # cloudy MS
    y_sar = jax.random.uniform(k2, (B, 2, H, W), jnp.float32)   # SAR

    init = Init(seed=0)
    params = build_unet_params(init)          # UNet() defaults: 28->13, inner=32, mults (1,2,4,8,8)
    gammas, num_timesteps = make_gammas()     # linear beta schedule, 8 steps

    noise_hat, noise = diffusion_cr_forward(params, gammas, num_timesteps,
                                            y_0, y_ms, y_sar, k3)
    jax.block_until_ready(noise_hat)
    jax.block_until_ready(noise)
    assert noise_hat.shape == (B, 13, H, W)
    assert noise.shape == (B, 13, H, W)
    assert bool(jnp.all(jnp.isfinite(noise_hat)))
    print("KERNEL_OK")
</pallas_src>

<mosaic_0001>
module attributes {stable_mosaic.version = 11 : i64} {
  func.func @_qsample_kernel(%arg0: i32, %arg1: memref<2x3328xf32, #tpu.memory_space<vmem>>, %arg2: memref<2x3328xf32, #tpu.memory_space<vmem>>, %arg3: memref<2x1xf32, #tpu.memory_space<vmem>>, %arg4: memref<2x3328xf32, #tpu.memory_space<vmem>>) attributes {dimension_semantics = [#tpu.dimension_semantics<arbitrary>], iteration_bounds = array<i64: 1>, scalar_prefetch = 0 : i64, scratch_operands = 0 : i64, tpu.core_type = #tpu.core_type<tc>, window_params = [{pipeline_mode = #tpu.pipeline_mode<synchronous>, transform_indices = @transform_0, window_bounds = array<i64: 2, 3328>}, {pipeline_mode = #tpu.pipeline_mode<synchronous>, transform_indices = @transform_1, window_bounds = array<i64: 2, 3328>}, {pipeline_mode = #tpu.pipeline_mode<synchronous>, transform_indices = @transform_2, window_bounds = array<i64: 2, 1>}, {pipeline_mode = #tpu.pipeline_mode<synchronous>, transform_indices = @transform_3, window_bounds = array<i64: 2, 3328>}]} {
    %c0 = arith.constant 0 : index
    %c0_0 = arith.constant 0 : index
    %0 = vector.load %arg3[%c0, %c0_0] : memref<2x1xf32, #tpu.memory_space<vmem>>, vector<2x1xf32>
    %1 = math.sqrt %0 : vector<2x1xf32>
    %c0_1 = arith.constant 0 : index
    %c0_2 = arith.constant 0 : index
    %2 = vector.load %arg1[%c0_1, %c0_2] : memref<2x3328xf32, #tpu.memory_space<vmem>>, vector<2x3328xf32>
    %3 = vector.broadcast %1 : vector<2x1xf32> to vector<2x3328xf32>
    %4 = arith.mulf %3, %2 : vector<2x3328xf32>
    %cst = arith.constant 1.000000e+00 : f32
    %5 = vector.broadcast %cst : f32 to vector<2x1xf32>
    %6 = arith.subf %5, %0 : vector<2x1xf32>
    %7 = math.sqrt %6 : vector<2x1xf32>
    %c0_3 = arith.constant 0 : index
    %c0_4 = arith.constant 0 : index
    %8 = vector.load %arg2[%c0_3, %c0_4] : memref<2x3328xf32, #tpu.memory_space<vmem>>, vector<2x3328xf32>
    %9 = vector.broadcast %7 : vector<2x1xf32> to vector<2x3328xf32>
    %10 = arith.mulf %9, %8 : vector<2x3328xf32>
    %11 = arith.addf %4, %10 : vector<2x3328xf32>
    %c0_5 = arith.constant 0 : index
    %c0_6 = arith.constant 0 : index
    %12 = vector.load %arg4[%c0_5, %c0_6] : memref<2x3328xf32, #tpu.memory_space<vmem>>, vector<2x3328xf32>
    tpu.vector_store %arg4[%c0_5, %c0_6], %11 {strides = array<i32>} : memref<2x3328xf32, #tpu.memory_space<vmem>>, vector<2x3328xf32>,
    return
  }
  func.func @transform_0(%arg0: i32) -> (i32, i32) {
    %c0_i32 = arith.constant 0 : i32
    %c0_i32_0 = arith.constant 0 : i32
    %c0_i32_1 = arith.constant 0 : i32
    return %c0_i32, %c0_i32_0 : i32, i32
  }
  func.func @transform_1(%arg0: i32) -> (i32, i32) {
    %c0_i32 = arith.constant 0 : i32
    %c0_i32_0 = arith.constant 0 : i32
    %c0_i32_1 = arith.constant 0 : i32
    return %c0_i32, %c0_i32_0 : i32, i32
  }
  func.func @transform_2(%arg0: i32) -> (i32, i32) {
    %c0_i32 = arith.constant 0 : i32
    %c0_i32_0 = arith.constant 0 : i32
    %c0_i32_1 = arith.constant 0 : i32
    return %c0_i32, %c0_i32_0 : i32, i32
  }
  func.func @transform_3(%arg0: i32) -> (i32, i32) {
    %c0_i32 = arith.constant 0 : i32
    %c0_i32_0 = arith.constant 0 : i32
    %c0_i32_1 = arith.constant 0 : i32
    return %c0_i32, %c0_i32_0 : i32, i32
  }
}

</mosaic_0001>

<bundles_post_ra>
// kernel: tpu_custom_call.1
= control target key start
LH: loop header
LB: loop body
LE: loop exit
PB: predicated region body
PF: predicated region fallthrough
CT: control target
= control target key end

     0   :  { %8 = vsyncpa [#allocation3], 0  ;;  %s908_s0 = inlined_call_operand.hbm [shape: f32[2,3328], index: 0, kind: input, shape index: {}]   ;;  %s909_s1 = inlined_call_operand.hbm [shape: f32[2,3328], index: 1, kind: input, shape index: {}]   ;;  %s910_s2 = inlined_call_operand.vmem [shape: f32[2,1], index: 2, kind: input, shape index: {}]   ;;  %s911_s3 = inlined_call_operand.hbm [shape: f32[2,3328], index: 3, kind: output, shape index: {}]  }
   0x1   :  { %9 = vsyncpa [#allocation6], 0 }
   0x2   :  { %10 = vsyncpa [#allocation4], 0  ;;  %s706_s12 = smov [#allocation2]   ;;  %s707_s14 = smov [#allocation5]  }
   0x3   :  { %s17_s13 = sshll.u32 %s706_s12, 4  ;;  %s27_s15 = sshll.u32 %s707_s14, 4  ;;  %s18_s13 = int_to_ptr.vmem [resolvable:$true] %s17_s13  ;;  %s28_s15 = int_to_ptr.vmem [resolvable:$true] %s27_s15 }
   0x4   :  { %s634_s18 = scalar_lea.hbm %s908_s0, 832 }
   0x5   :  { %p635_p0 = scmp.ne.s32.totalorder %s908_s0, %s634_s18  ;;  %p638_p1 = scmp.lt.u32.totalorder %s634_s18, %s908_s0 }
   0x7   :  { %p640_p2 = pnand %p638_p1, %p635_p0 }
   0x9   :  { %643 = shalt.err (!%p640_p2)
}
   0xa   :  { %s644_s23 = scalar_lea.vmem %s18_s13, 832  ;;  %p649_p4 = scmp.lt.s32.totalorder %s18_s13, %s18_s13 }
   0xb   :  { %p645_p3 = scmp.ne.s32.totalorder %s18_s13, %s644_s23  ;;  %p650_p5 = scmp.lt.s32.totalorder %s644_s23, %s644_s23 }
   0xd   :  { %p651_p6 = por %p650_p5, %p649_p4 }
   0xf   :  { %p652_p7 = pnand %p651_p6, %p645_p3 }
  0x11   :  { %655 = shalt.err (!%p652_p7)
}
  0x12   :  { %20 = dma.hbm_to_vmem [thread:$0]  %s908_s0, 832, %s18_s13, [#allocation3]  }
  0x13   :  { %s656_s28 = scalar_lea.hbm %s909_s1, 832 }
  0x14   :  { %p657_p8 = scmp.ne.s32.totalorder %s909_s1, %s656_s28  ;;  %p660_p9 = scmp.lt.u32.totalorder %s656_s28, %s909_s1 }
  0x16   :  { %p662_p10 = pnand %p660_p9, %p657_p8 }
  0x18   :  { %665 = shalt.err (!%p662_p10)
}
  0x19   :  { %s666_s6 = scalar_lea.vmem %s28_s15, 832  ;;  %p671_p12 = scmp.lt.s32.totalorder %s28_s15, %s28_s15 }
  0x1a   :  { %p667_p11 = scmp.ne.s32.totalorder %s28_s15, %s666_s6  ;;  %p672_p13 = scmp.lt.s32.totalorder %s666_s6, %s666_s6 }
  0x1c   :  { %p673_p0 = por %p672_p13, %p671_p12 }
  0x1e   :  { %p674_p1 = pnand %p673_p0, %p667_p11 }
  0x20   :  { %677 = shalt.err (!%p674_p1)
}
  0x21   :  { %30 = dma.hbm_to_vmem [thread:$0]  %s909_s1, 832, %s28_s15, [#allocation6]  }
  0x22   :  { %700 = dma.done.wait [#allocation3], 832  }
  0x23   :  { %701 = vsyncadd [#allocation3], 4294966464 }
  0x24   :  { %702 = dma.done.wait [#allocation6], 832  }
  0x25   :  { %703 = vsyncadd [#allocation6], 4294966464  ;;  %v708_v0 = vmov 0   ;;  %v39_v1 = vld [vmem:[%s910_s2] sm:$0x3]  ;;  %v70_v15 = vlaneseq  ;;  %v48_v19 = vld [vmem:[#allocation2 + $0x8] sm:$0xff] }
  0x26   :  { %617 = vset.pattern.permute.xlu0 %v708_v0  ;;  %630 = vrsqrt.f32 %v39_v1  ;;  %v228_v2 = vsub.f32 1.0, %v39_v1  ;;  %vm42_vm0 = vcmp.eq.f32.partialorder %v39_v1, inf  ;;  %v45_v4 = vand.u32 2147483648, %v39_v1  ;;  %v47_v18 = vld [vmem:[#allocation2] sm:$0xff]  ;;  %v49_v20 = vld [vmem:[#allocation2 + $0x10] sm:$0xff]  ;;  %v50_v23 = vld [vmem:[#allocation2 + $0x18] sm:$0xff] }
  0x27   :  { %vm44_vm1 = vcmp.eq.f32.partialorder %v39_v1, 0.0  ;;  %v709_v13 = vmov 1983009808   ;;  %v71_v17 = vshrl.u32 %v70_v15, 7  ;;  %v66_v22 = vcombine.high %v47_v18, %v47_v18  ;;  %v51_v27 = vld [vmem:[#allocation2 + $0x20] sm:$0xff]  ;;  %v52_v28 = vld [vmem:[#allocation2 + $0x28] sm:$0xff] }
  0x28   :  { %632 = vrsqrt.f32 %v228_v2  ;;  %vm231_vm2 = vcmp.eq.f32.partialorder %v228_v2, inf  ;;  %v234_v8 = vand.u32 2147483648, %v228_v2  ;;  %vm233_vm3 = vcmp.eq.f32.partialorder %v228_v2, 0.0  ;;  %v236_v36 = vld [vmem:[#allocation5] sm:$0xff]  ;;  %v237_v37 = vld [vmem:[#allocation5 + $0x8] sm:$0xff]  ;;  %v238_v41 = vld [vmem:[#allocation5 + $0x10] sm:$0xff] }
  0x29   :  { %v68_v14 = vunpack.c.l.s4 %v709_v13  ;;  %v83_v24 = vcombine.high %v48_v19, %v48_v19  ;;  %v100_v25 = vcombine.high %v49_v20, %v49_v20  ;;  %v117_v31 = vcombine.high %v50_v23, %v50_v23  ;;  %v239_v42 = vld [vmem:[#allocation5 + $0x18] sm:$0xff]  ;;  %v240_v47 = vld [vmem:[#allocation5 + $0x20] sm:$0xff]  ;;  %v241_v48 = vld [vmem:[#allocation5 + $0x28] sm:$0xff]  ;;  %s710_s1 = smov [#allocation7]  }
  0x2a   :  { %v134_v39 = vcombine.high %v51_v27, %v51_v27  ;;  %v151_v40 = vcombine.high %v52_v28, %v52_v28  ;;  %v255_v51 = vcombine.high %v236_v36, %v236_v36  ;;  %v272_v52 = vcombine.high %v237_v37, %v237_v37  ;;  %v801_v57 = vld.sshfl [vmem:[#allocation2 + $0x30] sm:$0x33 pattern:$0x76325410]  ;;  %s599_s2 = sshll.u32 %s710_s1, 4  ;;  %s600_s2 = int_to_ptr.vmem [resolvable:$true] %s599_s2 }
  0x2b   :  { %v69_v16 = vunpack.c.0.s8 %v68_v14  ;;  %v289_v55 = vcombine.high %v238_v41, %v238_v41  ;;  %v306_v56 = vcombine.high %v239_v42, %v239_v42  ;;  %v323_v60 = vcombine.high %v240_v47, %v240_v47  ;;  %s678_s10 = scalar_lea.vmem %s600_s2, 832  ;;  %p683_p3 = scmp.lt.s32.totalorder %s600_s2, %s600_s2 }
  0x2c   :  { %v340_v61 = vcombine.high %v241_v48, %v241_v48  ;;  %p679_p2 = scmp.ne.s32.totalorder %s600_s2, %s678_s10  ;;  %p684_p4 = scmp.lt.s32.totalorder %s678_s10, %s678_s10 }
  0x2d   :  { %v758_v21 = vsub.s32 %v69_v16, %v71_v17 }
  0x2e   :  { %p685_p5 = por %p684_p4, %p683_p3 }
  0x2f   :  { %922 = vst [vmem:[#allocation11_spill] sm:$0xff] %v758_v21  ;;  %v761_v26 = vrot.slane %v47_v18, %v758_v21  ;;  %v764_v29 = vrot.slane %v66_v22, %v758_v21  ;;  %v767_v30 = vrot.slane %v48_v19, %v758_v21  ;;  %v770_v32 = vrot.slane %v83_v24, %v758_v21 }
  0x30   :  { %v631_v3 = vpop.eup %630  ;;  %v773_v33 = vrot.slane %v49_v20, %v758_v21  ;;  %v776_v34 = vrot.slane %v100_v25, %v758_v21  ;;  %v779_v35 = vrot.slane %v50_v23, %v758_v21  ;;  %v788_v45 = vrot.slane %v117_v31, %v758_v21  ;;  %p686_p6 = pnand %p685_p5, %p679_p2 }
  0x31   :  { %v41_v5 = vmul.f32 %v631_v3, %v39_v1  ;;  %v81_v38 = vcombine.high %v761_v26, %v761_v26  ;;  %v82_v43 = vcombine.high %v764_v29, %v764_v29  ;;  %v98_v44 = vcombine.high %v767_v30, %v767_v30 }
  0x32   :  { %v633_v6 = vpop.eup %632  ;;  %v791_v46 = vrot.slane %v51_v27, %v758_v21  ;;  %v99_v49 = vcombine.high %v770_v32, %v770_v32  ;;  %v115_v50 = vcombine.high %v773_v33, %v773_v33  ;;  %v116_v53 = vcombine.high %v776_v34, %v776_v34 }
  0x33   :  { %v43_v7 = vsel %vm42_vm0, %v39_v1, %v41_v5  ;;  %v230_v10 = vmul.f32 %v633_v6, %v228_v2  ;;  %v132_v54 = vcombine.high %v779_v35, %v779_v35  ;;  %v148_v58 = vrot.slane %v134_v39, %v758_v21 }
  0x34   :  { %v46_v9 = vsel %vm44_vm1, %v45_v4, %v43_v7  ;;  %v158_v59 = vrot.slane %v52_v28, %v758_v21  ;;  %v133_v62 = vcombine.high %v788_v45, %v788_v45  ;;  %v149_v63 = vcombine.high %v791_v46, %v791_v46 }
  0x35   :  { %56 = vperm.xlu0 %617, %v46_v9   ;;  %v232_v11 = vsel %vm231_vm2, %v228_v2, %v230_v10  ;;  %v165_v0 = vrot.slane %v151_v40, %v758_v21  ;;  %v262_v1 = vrot.slane %v236_v36, %v758_v21  ;;  %v269_v2 = vrot.slane %v255_v51, %v758_v21  ;;  %v830_v10 = vld.sshfl [vmem:[#allocation5 + $0x30] sm:$0x33 pattern:$0x76325410] }
  0x36   :  { %v235_v12 = vsel %vm233_vm3, %v234_v8, %v232_v11  ;;  %v279_v3 = vrot.slane %v237_v37, %v758_v21  ;;  %v814_v4 = vrot.slane %v272_v52, %v758_v21  ;;  %v817_v5 = vrot.slane %v238_v41, %v758_v21  ;;  %926 = vst [vmem:[#allocation15_spill] sm:$0xff] %v830_v10 }
  0x37   :  { %v175_v6 = vcombine.high %v801_v57, %v801_v57  ;;  %v822_v7 = vrot.slane %v289_v55, %v758_v21  ;;  %v825_v8 = vrot.slane %v239_v42, %v758_v21  ;;  %v828_v9 = vrot.slane %v306_v56, %v758_v21 }
  0x38   :  { %v833_v11 = vrot.slane %v240_v47, %v758_v21  ;;  %v839_v13 = vrot.slane %v241_v48, %v758_v21  ;;  %v842_v14 = vrot.slane %v340_v61, %v758_v21  ;;  %v150_v15 = vcombine.high %v148_v58, %v148_v58 }
  0x39   :  { %245 = vperm.xlu0 %617, %v235_v12   ;;  %923 = vst [vmem:[#allocation12_spill] sm:$0xff] %v822_v7  ;;  %924 = vst [vmem:[#allocation13_spill] sm:$0xff] %v825_v8  ;;  %v836_v12 = vrot.slane %v323_v60, %v758_v21  ;;  %v166_v16 = vcombine.high %v158_v59, %v158_v59  ;;  %v167_v17 = vcombine.high %v165_v0, %v165_v0 }
  0x3a   :  { %925 = vst [vmem:[#allocation14_spill] sm:$0xff] %v828_v9  ;;  %927 = vst [vmem:[#allocation16_spill] sm:$0xff] %v833_v11  ;;  %v270_v18 = vcombine.high %v262_v1, %v262_v1  ;;  %v271_v19 = vcombine.high %v269_v2, %v269_v2  ;;  %v287_v20 = vcombine.high %v279_v3, %v279_v3 }
  0x3b   :  { %928 = vst [vmem:[#allocation17_spill] sm:$0xff] %v836_v12  ;;  %929 = vst [vmem:[#allocation18_spill] sm:$0xff] %v839_v13  ;;  %v288_v22 = vcombine.high %v814_v4, %v814_v4  ;;  %v304_v23 = vcombine.high %v817_v5, %v817_v5  ;;  %v305_v24 = vcombine.high %v822_v7, %v822_v7 }
  0x3c   :  { %930 = vst [vmem:[#allocation19_spill] sm:$0xff] %v842_v14  ;;  %v321_v25 = vcombine.high %v825_v8, %v825_v8  ;;  %v322_v27 = vcombine.high %v828_v9, %v828_v9  ;;  %v364_v28 = vcombine.high %v830_v10, %v830_v10  ;;  %v338_v36 = vcombine.high %v833_v11, %v833_v11 }
  0x3d   :  { %v339_v37 = vcombine.high %v836_v12, %v836_v12  ;;  %v355_v39 = vcombine.high %v839_v13, %v839_v13  ;;  %v356_v40 = vcombine.high %v842_v14, %v842_v14 }
  0xb4   :  { %v57_v31 = vpop.permute.xlu0 %56 }
  0xb5   :  { %v202_v41 = vmul.f32 %v761_v26, %v57_v31  ;;  %v203_v42 = vmul.f32 %v81_v38, %v57_v31  ;;  %v204_v47 = vmul.f32 %v764_v29, %v57_v31  ;;  %v205_v48 = vmul.f32 %v82_v43, %v57_v31 }
  0xb6   :  { %v206_v51 = vmul.f32 %v767_v30, %v57_v31  ;;  %v207_v52 = vmul.f32 %v98_v44, %v57_v31  ;;  %v208_v55 = vmul.f32 %v770_v32, %v57_v31  ;;  %v209_v56 = vmul.f32 %v99_v49, %v57_v31 }
  0xb7   :  { %v210_v60 = vmul.f32 %v773_v33, %v57_v31  ;;  %v211_v61 = vmul.f32 %v115_v50, %v57_v31  ;;  %v212_v21 = vmul.f32 %v776_v34, %v57_v31  ;;  %v213_v10 = vmul.f32 %v116_v53, %v57_v31 }
  0xb8   :  { %v246_v13 = vpop.permute.xlu0 %245  ;;  %v214_v14 = vmul.f32 %v779_v35, %v57_v31  ;;  %v215_v26 = vmul.f32 %v132_v54, %v57_v31  ;;  %v216_v38 = vmul.f32 %v788_v45, %v57_v31  ;;  %v217_v29 = vmul.f32 %v133_v62, %v57_v31 }
  0xb9   :  { %v218_v43 = vmul.f32 %v791_v46, %v57_v31  ;;  %v219_v30 = vmul.f32 %v149_v63, %v57_v31  ;;  %v220_v44 = vmul.f32 %v148_v58, %v57_v31  ;;  %v221_v12 = vmul.f32 %v150_v15, %v57_v31  ;;  %v931_v63 = vld [vmem:[#allocation12_spill] sm:$0xff] }
  0xba   :  { %v222_v32 = vmul.f32 %v158_v59, %v57_v31  ;;  %v223_v49 = vmul.f32 %v166_v16, %v57_v31  ;;  %v224_v11 = vmul.f32 %v165_v0, %v57_v31  ;;  %v225_v33 = vmul.f32 %v167_v17, %v57_v31  ;;  %v932_v0 = vld [vmem:[#allocation13_spill] sm:$0xff] }
  0xbb   :  { %v226_v50 = vmul.f32 %v801_v57, %v57_v31  ;;  %v227_v34 = vmul.f32 %v175_v6, %v57_v31  ;;  %v391_v53 = vmul.f32 %v262_v1, %v246_v13  ;;  %v392_v9 = vmul.f32 %v270_v18, %v246_v13  ;;  %v933_v57 = vld [vmem:[#allocation14_spill] sm:$0xff]  ;;  %v934_v18 = vld [vmem:[#allocation16_spill] sm:$0xff] }
  0xbc   :  { %v393_v8 = vmul.f32 %v269_v2, %v246_v13  ;;  %v394_v35 = vmul.f32 %v271_v19, %v246_v13  ;;  %v395_v54 = vmul.f32 %v279_v3, %v246_v13  ;;  %v396_v7 = vmul.f32 %v287_v20, %v246_v13  ;;  %v935_v3 = vld [vmem:[#allocation17_spill] sm:$0xff] }
  0xbd   :  { %v397_v45 = vmul.f32 %v814_v4, %v246_v13  ;;  %v398_v62 = vmul.f32 %v288_v22, %v246_v13  ;;  %v399_v46 = vmul.f32 %v817_v5, %v246_v13  ;;  %v400_v58 = vmul.f32 %v304_v23, %v246_v13  ;;  %v936_v4 = vld [vmem:[#allocation18_spill] sm:$0xff]  ;;  %v937_v23 = vld [vmem:[#allocation19_spill] sm:$0xff] }
  0xbe   :  { %v401_v59 = vmul.f32 %v931_v63, %v246_v13  ;;  %v402_v15 = vmul.f32 %v305_v24, %v246_v13  ;;  %v403_v16 = vmul.f32 %v932_v0, %v246_v13  ;;  %v404_v17 = vmul.f32 %v321_v25, %v246_v13  ;;  %v938_v0 = vld [vmem:[#allocation15_spill] sm:$0xff] }
  0xbf   :  { %v405_v6 = vmul.f32 %v933_v57, %v246_v13  ;;  %v406_v1 = vmul.f32 %v322_v27, %v246_v13  ;;  %v407_v2 = vmul.f32 %v934_v18, %v246_v13  ;;  %v408_v19 = vmul.f32 %v338_v36, %v246_v13 }
  0xc0   :  { %v409_v20 = vmul.f32 %v935_v3, %v246_v13  ;;  %v410_v31 = vmul.f32 %v339_v37, %v246_v13  ;;  %v411_v22 = vmul.f32 %v936_v4, %v246_v13  ;;  %v412_v5 = vmul.f32 %v355_v39, %v246_v13 }
  0xc1   :  { %v413_v63 = vmul.f32 %v937_v23, %v246_v13  ;;  %v414_v24 = vmul.f32 %v356_v40, %v246_v13  ;;  %v415_v25 = vmul.f32 %v938_v0, %v246_v13  ;;  %v416_v57 = vmul.f32 %v364_v28, %v246_v13 }
  0xc2   :  { %v417_v27 = vadd.f32 %v391_v53, %v202_v41  ;;  %v418_v18 = vadd.f32 %v392_v9, %v203_v42  ;;  %v419_v36 = vadd.f32 %v393_v8, %v204_v47  ;;  %v420_v3 = vadd.f32 %v394_v35, %v205_v48 }
  0xc3   :  { %v421_v37 = vadd.f32 %v395_v54, %v206_v51  ;;  %v422_v4 = vadd.f32 %v396_v7, %v207_v52  ;;  %v423_v39 = vadd.f32 %v397_v45, %v208_v55  ;;  %v424_v23 = vadd.f32 %v398_v62, %v209_v56 }
  0xc4   :  { %v425_v40 = vadd.f32 %v399_v46, %v210_v60  ;;  %v426_v0 = vadd.f32 %v400_v58, %v211_v61  ;;  %v427_v13 = vadd.f32 %v401_v59, %v212_v21  ;;  %v428_v28 = vadd.f32 %v402_v15, %v213_v10 }
  0xc5   :  { %v429_v41 = vadd.f32 %v403_v16, %v214_v14  ;;  %v430_v53 = vadd.f32 %v404_v17, %v215_v26  ;;  %v431_v9 = vadd.f32 %v405_v6, %v216_v38  ;;  %v432_v42 = vadd.f32 %v406_v1, %v217_v29  ;;  %v939_v14 = vld [vmem:[#allocation11_spill] sm:$0xff] }
  0xc6   :  { %v433_v8 = vadd.f32 %v407_v2, %v218_v43  ;;  %v434_v47 = vadd.f32 %v408_v19, %v219_v30  ;;  %v435_v35 = vadd.f32 %v409_v20, %v220_v44  ;;  %v436_v48 = vadd.f32 %v410_v31, %v221_v12 }
  0xc7   :  { %v437_v51 = vadd.f32 %v411_v22, %v222_v32  ;;  %v438_v54 = vadd.f32 %v412_v5, %v223_v49  ;;  %v439_v7 = vadd.f32 %v413_v63, %v224_v11  ;;  %v440_v52 = vadd.f32 %v414_v24, %v225_v33 }
  0xc8   :  { %v441_v45 = vadd.f32 %v415_v25, %v226_v50  ;;  %v442_v55 = vadd.f32 %v416_v57, %v227_v34  ;;  %v469_v56 = vcombine.low %v417_v27, %v418_v18  ;;  %v470_v62 = vcombine.low %v419_v36, %v420_v3 }
  0xc9   :  { %v486_v60 = vcombine.low %v421_v37, %v422_v4  ;;  %v487_v61 = vcombine.low %v423_v39, %v424_v23  ;;  %v503_v21 = vcombine.low %v425_v40, %v426_v0  ;;  %v504_v10 = vcombine.low %v427_v13, %v428_v28 }
  0xca   :  { %v477_v26 = vrot.slane %v469_v56, %v939_v14  ;;  %v484_v38 = vrot.slane %v470_v62, %v939_v14  ;;  %v520_v29 = vcombine.low %v429_v41, %v430_v53  ;;  %v521_v43 = vcombine.low %v431_v9, %v432_v42 }
  0xcb   :  { %v494_v12 = vrot.slane %v486_v60, %v939_v14  ;;  %v501_v30 = vrot.slane %v487_v61, %v939_v14  ;;  %v511_v11 = vrot.slane %v503_v21, %v939_v14  ;;  %v518_v44 = vrot.slane %v504_v10, %v939_v14 }
  0xcc   :  { %v485_v32 = vcombine.low %v477_v26, %v484_v38  ;;  %v528_v49 = vrot.slane %v520_v29, %v939_v14  ;;  %v535_v33 = vrot.slane %v521_v43, %v939_v14  ;;  %v537_v50 = vcombine.low %v433_v8, %v434_v47 }
  0xcd   :  { %v502_v34 = vcombine.low %v494_v12, %v501_v30  ;;  %v519_v46 = vcombine.low %v511_v11, %v518_v44  ;;  %v538_v58 = vcombine.low %v435_v35, %v436_v48  ;;  %v554_v59 = vcombine.low %v437_v51, %v438_v54 }
  0xce   :  { %v536_v15 = vcombine.low %v528_v49, %v535_v33  ;;  %v545_v16 = vrot.slane %v537_v50, %v939_v14  ;;  %v555_v17 = vcombine.low %v439_v7, %v440_v52  ;;  %v571_v6 = vcombine.low %v441_v45, %v442_v55  ;;  %586 = vst [vmem:[#allocation7] sm:$0xff] %v485_v32 }
  0xcf   :  { %v552_v1 = vrot.slane %v538_v58, %v939_v14  ;;  %v562_v2 = vrot.slane %v554_v59, %v939_v14  ;;  %587 = vst [vmem:[#allocation7 + $0x8] sm:$0xff] %v502_v34  ;;  %588 = vst [vmem:[#allocation7 + $0x10] sm:$0xff] %v519_v46 }
  0xd0   :  { %v569_v19 = vrot.slane %v555_v17, %v939_v14  ;;  %589 = vst [vmem:[#allocation7 + $0x18] sm:$0xff] %v536_v15  ;;  %611 = vst.sshfl [vmem:[#allocation7 + $0x30] sm:$0x33 pattern:$0x76325410] %v571_v6 }
  0xd1   :  { %v553_v20 = vcombine.low %v545_v16, %v552_v1 }
  0xd2   :  { %v570_v31 = vcombine.low %v562_v2, %v569_v19 }
  0xd3   :  { %590 = vst [vmem:[#allocation7 + $0x20] sm:$0xff] %v553_v20 }
  0xd4   :  { %591 = vst [vmem:[#allocation7 + $0x28] sm:$0xff] %v570_v31 }
  0xd5   :  { %689 = shalt.err (!%p686_p6)
}
  0xd6   :  { %s690_s13 = scalar_lea.hbm %s911_s3, 832 }
  0xd7   :  { %p691_p7 = scmp.ne.s32.totalorder %s911_s3, %s690_s13  ;;  %p694_p8 = scmp.lt.u32.totalorder %s690_s13, %s911_s3 }
  0xd9   :  { %p696_p9 = pnand %p694_p8, %p691_p7 }
  0xdb   :  { %699 = shalt.err (!%p696_p9)
}
  0xdc   :  { %602 = dma.vmem_to_hbm [thread:$0]  %s600_s2, 832, %s911_s3, [#allocation4]  }
  0xdd   :  { %704 = dma.done.wait [#allocation4], 832  }
  0xde   :  { %705 = vsyncadd [#allocation4], 4294966464 }
  0xdf   :  { %606 = vsyncpa [#allocation3], 1 }
  0xe0   :  { %607 = vsyncpa [#allocation6], 1 }
  0xe1   :  { %608 = vsyncpa [#allocation4], 1 }

</bundles_post_ra>
